<compile_context>
chip_gen: v6e
topology: v6e:2x2x1
jax: 0.10.0
libtpu: 0.0.40
codegen_flags: <defaults>
</compile_context>

<pallas_src>
import jax
import jax.numpy as jnp
import numpy as np
from jax.experimental import pallas as pl
from jax.experimental.pallas import tpu as pltpu


def _make_attention_kernel(softmax_temp):
    inv_t = float(1.0 / softmax_temp)

    def kernel(x_ref,       # [tile_b, enc]  encoder_outputs[s, b0:b0+tile_b, :]
               last_ref,    # [tile_b, dec]  hidden[-1][b0:b0+tile_b, :]
               w_dec_ref,   # [dec, enc]
               w_enc_ref,   # [enc, enc]
               b_attn_ref,  # [1, enc]  (f32)
               w_v_ref,     # [1, enc]  (f32)
               b_v_ref,     # [1, 1]    (f32)
               out_ref,     # [tile_b, S] (f32) resident across the s axis
               h_ref):      # [tile_b, enc] f32 VMEM scratch
        s = pl.program_id(1)

        # Once per batch tile: hidden-state projection + logit accumulator init.
        @pl.when(s == 0)
        def _init():
            h_ref[...] = (
                jnp.dot(last_ref[...], w_dec_ref[...],
                        preferred_element_type=jnp.float32)
                + b_attn_ref[...])
            out_ref[...] = jnp.zeros_like(out_ref)

        # E[s, b, :] = tanh(enc_out[s, b, :] @ W_enc + h[b, :])      (MXU + VPU)
        e = jnp.tanh(
            jnp.dot(x_ref[...], w_enc_ref[...],
                    preferred_element_type=jnp.float32)
            + h_ref[...])

        # a[s, b] = E[s, b, :] . v + b_v  ->  VPU multiply + lane reduce
        # instead of an N=1 MXU matmul.
        a = jnp.sum(e * w_v_ref[...], axis=-1, keepdims=True) + b_v_ref[...]

        # Deposit this src position's logits into lane s of the resident block.
        col = jax.lax.broadcasted_iota(jnp.int32, out_ref.shape, 1)
        out_ref[...] = out_ref[...] + jnp.where(col == s, a, 0.0)

        # Last src position: per-batch softmax over the lane (src_len) axis.
        @pl.when(s == pl.num_programs(1) - 1)
        def _finalize():
            logits = out_ref[...] * inv_t
            m = jnp.max(logits, axis=-1, keepdims=True)   # max-shift (stable,
            ex = jnp.exp(logits - m)                      #  same result)
            denom = jnp.sum(ex, axis=-1, keepdims=True)
            # Exact reciprocal-and-multiply; pl.reciprocal(..., approx=True)
            # trades ~1e-4 relative error for the EUP fast path if acceptable.
            out_ref[...] = ex * pl.reciprocal(denom)

    return kernel


def _choose_tile_b(src_len, batch, enc, act_itemsize):
    """Largest batch tile that divides `batch`, is a multiple of 8 sublanes
    (unless it covers the whole batch), and keeps the per-step VMEM footprint
    (double-buffered encoder block + f32 hidden scratch + resident f32 output
    block) well inside every generation's default scoped-VMEM budget
    (16 MiB on v5e, 32 MiB on v6e/v7x; v7x has only 64 MiB physical)."""
    if batch <= 8 or batch % 8 != 0:
        return batch
    per_row = 2 * enc * act_itemsize + 4 * enc + 4 * src_len
    budget = 4 * 1024 * 1024
    cap = max(8, budget // max(1, per_row))
    tb = min(batch, 512, cap)
    tb = max(8, tb - tb % 8)
    while batch % tb:
        tb -= 8
    return tb


def attention_forward(hidden, encoder_outputs, w_attn, b_attn, w_v, b_v,
                      softmax_temp=1.0):
    """hidden: [L, B, dec], encoder_outputs: [S, B, enc] -> [S, B, 1] (f32).

    w_attn is the [dec+enc, enc] (input-major) weight for the concat ordering
    [hidden, encoder]; w_v is [enc, 1]; biases are 1-D.  Activations may be
    f32 or bf16 (bf16 halves streamed HBM bytes on v6e/v7x)."""
    S, B, enc = encoder_outputs.shape
    dec = hidden.shape[-1]
    assert w_attn.shape == (dec + enc, enc)

    act_dtype = encoder_outputs.dtype
    last = hidden[-1].astype(act_dtype)                     # [B, dec]
    w_dec = w_attn[:dec, :].astype(act_dtype)               # [dec, enc]
    w_enc = w_attn[dec:, :].astype(act_dtype)               # [enc, enc]
    b_attn_row = b_attn.reshape(1, enc).astype(jnp.float32)
    w_v_row = w_v.reshape(1, enc).astype(jnp.float32)
    b_v_11 = b_v.reshape(1, 1).astype(jnp.float32)

    tile_b = _choose_tile_b(S, B, enc, act_dtype.itemsize)
    n_b_tiles = B // tile_b

    kernel = _make_attention_kernel(float(softmax_temp))

    out_bs = pl.pallas_call(
        kernel,
        out_shape=jax.ShapeDtypeStruct((B, S), jnp.float32),
        grid_spec=pltpu.PrefetchScalarGridSpec(
            num_scalar_prefetch=0,
            grid=(n_b_tiles, S),
            in_specs=[
                # encoder_outputs [S, B, enc]: one src position (squeezed) and
                # one batch tile per step -> kernel sees a 2-D [tile_b, enc].
                pl.BlockSpec((None, tile_b, enc), lambda i, s: (s, i, 0)),
                pl.BlockSpec((tile_b, dec), lambda i, s: (i, 0)),
                # Weights / biases stay resident across the whole grid.
                pl.BlockSpec((dec, enc), lambda i, s: (0, 0)),
                pl.BlockSpec((enc, enc), lambda i, s: (0, 0)),
                pl.BlockSpec((1, enc), lambda i, s: (0, 0)),
                pl.BlockSpec((1, enc), lambda i, s: (0, 0)),
                pl.BlockSpec((1, 1), lambda i, s: (0, 0)),
            ],
            # Lane-dense [tile_b, S] output block, resident across the s axis
            # (doubles as the logit accumulator).
            out_specs=pl.BlockSpec((tile_b, S), lambda i, s: (i, 0)),
            scratch_shapes=[pltpu.VMEM((tile_b, enc), jnp.float32)],
        ),
        compiler_params=pltpu.CompilerParams(
            dimension_semantics=("parallel", "arbitrary"),
            vmem_limit_bytes=32 * 1024 * 1024,   # safe on v7x's 64 MiB physical
        ),
    )(encoder_outputs, last, w_dec, w_enc, b_attn_row, w_v_row, b_v_11)

    # [B, S] -> [S, B, 1]; tiny (no feature axis) fix-up in XLA.
    return jnp.swapaxes(out_bs, 0, 1)[:, :, None]


if __name__ == "__main__":
    n_layers, batch, src_len = 2, 2, 8
    enc_hid_dim, dec_hid_dim = 32, 32
    softmax_temp = 1.0

    key = jax.random.PRNGKey(0)
    k1, k2, k3, k4, k5, k6 = jax.random.split(key, 6)

    hidden = jax.random.normal(k1, (n_layers, batch, dec_hid_dim), jnp.float32)
    encoder_outputs = jax.random.normal(k2, (src_len, batch, enc_hid_dim),
                                        jnp.float32)

    # nn.Linear-style uniform init, stored input-major ([in, out]).
    H = enc_hid_dim + dec_hid_dim
    bound1 = 1.0 / np.sqrt(H)
    w_attn = jax.random.uniform(k3, (H, enc_hid_dim), jnp.float32,
                                -bound1, bound1)
    b_attn = jax.random.uniform(k4, (enc_hid_dim,), jnp.float32,
                                -bound1, bound1)
    bound2 = 1.0 / np.sqrt(enc_hid_dim)
    w_v = jax.random.uniform(k5, (enc_hid_dim, 1), jnp.float32,
                             -bound2, bound2)
    b_v = jax.random.uniform(k6, (1,), jnp.float32, -bound2, bound2)

    out = attention_forward(hidden, encoder_outputs, w_attn, b_attn, w_v, b_v,
                            softmax_temp)
    out = jax.block_until_ready(out)

    # Pure-JAX reference (mirrors the PyTorch module exactly).
    last = hidden[-1]
    hiddens = jnp.broadcast_to(last[None], (src_len, batch, dec_hid_dim))
    concat = jnp.concatenate([hiddens, encoder_outputs], axis=2)
    E = jnp.tanh(concat @ w_attn + b_attn)
    a = E @ w_v + b_v
    ex = jnp.exp(a / softmax_temp)
    ref = ex / jnp.sum(ex, axis=0)

    assert out.shape == (src_len, batch, 1)
    np.testing.assert_allclose(np.asarray(out), np.asarray(ref),
                               rtol=1e-5, atol=1e-6)

    # bf16 activation streaming (v6e/v7x HBM-bandwidth path); math stays f32.
    out_bf16 = attention_forward(hidden.astype(jnp.bfloat16),
                                 encoder_outputs.astype(jnp.bfloat16),
                                 w_attn, b_attn, w_v, b_v, softmax_temp)
    out_bf16 = jax.block_until_ready(out_bf16)
    assert out_bf16.shape == (src_len, batch, 1)
    np.testing.assert_allclose(np.asarray(out_bf16), np.asarray(ref),
                               rtol=1e-1, atol=2e-2)

    print("KERNEL_OK")
</pallas_src>

<mosaic_0001>
module attributes {stable_mosaic.version = 11 : i64} {
  func.func @kernel(%arg0: i32, %arg1: i32, %arg2: memref<1x2x32xf32, #tpu.memory_space<vmem>>, %arg3: memref<2x32xf32, #tpu.memory_space<vmem>>, %arg4: memref<32x32xf32, #tpu.memory_space<vmem>>, %arg5: memref<32x32xf32, #tpu.memory_space<vmem>>, %arg6: memref<1x32xf32, #tpu.memory_space<vmem>>, %arg7: memref<1x32xf32, #tpu.memory_space<vmem>>, %arg8: memref<1x1xf32, #tpu.memory_space<vmem>>, %arg9: memref<2x8xf32, #tpu.memory_space<vmem>>, %arg10: memref<2x32xf32, #tpu.memory_space<vmem>>) attributes {dimension_semantics = [#tpu.dimension_semantics<parallel>, #tpu.dimension_semantics<arbitrary>], iteration_bounds = array<i64: 1, 8>, scalar_prefetch = 0 : i64, scratch_operands = 1 : i64, tpu.core_type = #tpu.core_type<tc>, window_params = [{transform_indices = @transform_0, window_bounds = array<i64: 1, 2, 32>}, {transform_indices = @transform_1, window_bounds = array<i64: 2, 32>}, {pipeline_mode = #tpu.pipeline_mode<synchronous>, transform_indices = @transform_2, window_bounds = array<i64: 32, 32>}, {pipeline_mode = #tpu.pipeline_mode<synchronous>, transform_indices = @transform_3, window_bounds = array<i64: 32, 32>}, {pipeline_mode = #tpu.pipeline_mode<synchronous>, transform_indices = @transform_4, window_bounds = array<i64: 1, 32>}, {pipeline_mode = #tpu.pipeline_mode<synchronous>, transform_indices = @transform_5, window_bounds = array<i64: 1, 32>}, {pipeline_mode = #tpu.pipeline_mode<synchronous>, transform_indices = @transform_6, window_bounds = array<i64: 1, 1>}, {transform_indices = @transform_7, window_bounds = array<i64: 2, 8>}]} {
    %c0_i32 = arith.constant 0 : i32
    %0 = arith.cmpi eq, %arg1, %c0_i32 : i32
    %1 = arith.extui %0 : i1 to i32
    %c0_i32_0 = arith.constant 0 : i32
    %2 = arith.cmpi ne, %1, %c0_i32_0 : i32
    scf.if %2 {
      %c0_18 = arith.constant 0 : index
      %c0_19 = arith.constant 0 : index
      %31 = vector.load %arg3[%c0_18, %c0_19] : memref<2x32xf32, #tpu.memory_space<vmem>>, vector<2x32xf32>
      %c0_20 = arith.constant 0 : index
      %c0_21 = arith.constant 0 : index
      %32 = vector.load %arg4[%c0_20, %c0_21] : memref<32x32xf32, #tpu.memory_space<vmem>>, vector<32x32xf32>
      %cst_22 = arith.constant dense<0.000000e+00> : vector<2x32xf32>
      %33 = tpu.matmul %31, %32, %cst_22 {dimension_numbers = #tpu.dot_dimension_numbers<[1], [0], [0], [1], [0, 0, 1, 1], [], []>} : vector<2x32xf32>, vector<32x32xf32>, vector<2x32xf32> -> vector<2x32xf32>
      %c0_23 = arith.constant 0 : index
      %c0_24 = arith.constant 0 : index
      %34 = vector.load %arg6[%c0_23, %c0_24] : memref<1x32xf32, #tpu.memory_space<vmem>>, vector<1x32xf32>
      %35 = vector.broadcast %34 : vector<1x32xf32> to vector<2x32xf32>
      %36 = arith.addf %33, %35 : vector<2x32xf32>
      %c0_25 = arith.constant 0 : index
      %c0_26 = arith.constant 0 : index
      %37 = vector.load %arg10[%c0_25, %c0_26] : memref<2x32xf32, #tpu.memory_space<vmem>>, vector<2x32xf32>
      tpu.vector_store %arg10[%c0_25, %c0_26], %36 {strides = array<i32>} : memref<2x32xf32, #tpu.memory_space<vmem>>, vector<2x32xf32>,
      %cst_27 = arith.constant 0.000000e+00 : f32
      %38 = vector.broadcast %cst_27 : f32 to vector<2x8xf32>
      %c0_28 = arith.constant 0 : index
      %c0_29 = arith.constant 0 : index
      %39 = vector.load %arg9[%c0_28, %c0_29] : memref<2x8xf32, #tpu.memory_space<vmem>>, vector<2x8xf32>
      tpu.vector_store %arg9[%c0_28, %c0_29], %38 {strides = array<i32>} : memref<2x8xf32, #tpu.memory_space<vmem>>, vector<2x8xf32>,
    } else {
    }
    %c0 = arith.constant 0 : index
    %c0_1 = arith.constant 0 : index
    %c0_2 = arith.constant 0 : index
    %3 = vector.load %arg2[%c0, %c0_1, %c0_2] : memref<1x2x32xf32, #tpu.memory_space<vmem>>, vector<1x2x32xf32>
    %4 = vector.shape_cast %3 : vector<1x2x32xf32> to vector<2x32xf32>
    %c0_3 = arith.constant 0 : index
    %c0_4 = arith.constant 0 : index
    %5 = vector.load %arg5[%c0_3, %c0_4] : memref<32x32xf32, #tpu.memory_space<vmem>>, vector<32x32xf32>
    %cst = arith.constant dense<0.000000e+00> : vector<2x32xf32>
    %6 = tpu.matmul %4, %5, %cst {dimension_numbers = #tpu.dot_dimension_numbers<[1], [0], [0], [1], [0, 0, 1, 1], [], []>} : vector<2x32xf32>, vector<32x32xf32>, vector<2x32xf32> -> vector<2x32xf32>
    %c0_5 = arith.constant 0 : index
    %c0_6 = arith.constant 0 : index
    %7 = vector.load %arg10[%c0_5, %c0_6] : memref<2x32xf32, #tpu.memory_space<vmem>>, vector<2x32xf32>
    %8 = arith.addf %6, %7 : vector<2x32xf32>
    %9 = math.tanh %8 : vector<2x32xf32>
    %c0_7 = arith.constant 0 : index
    %c0_8 = arith.constant 0 : index
    %10 = vector.load %arg7[%c0_7, %c0_8] : memref<1x32xf32, #tpu.memory_space<vmem>>, vector<1x32xf32>
    %11 = vector.broadcast %10 : vector<1x32xf32> to vector<2x32xf32>
    %12 = arith.mulf %9, %11 : vector<2x32xf32>
    %cst_9 = arith.constant dense<0.000000e+00> : vector<2xf32>
    %13 = vector.multi_reduction <add>, %12, %cst_9 [1] : vector<2x32xf32> to vector<2xf32>
    %14 = vector.shape_cast %13 : vector<2xf32> to vector<2x1xf32>
    %c0_10 = arith.constant 0 : index
    %c0_11 = arith.constant 0 : index
    %15 = vector.load %arg8[%c0_10, %c0_11] : memref<1x1xf32, #tpu.memory_space<vmem>>, vector<1x1xf32>
    %16 = vector.broadcast %15 : vector<1x1xf32> to vector<2x1xf32>
    %17 = arith.addf %14, %16 : vector<2x1xf32>
    %18 = tpu.iota {dimensions = array<i32: 1>} : vector<2x8xi32>
    %c0_12 = arith.constant 0 : index
    %c0_13 = arith.constant 0 : index
    %19 = vector.load %arg9[%c0_12, %c0_13] : memref<2x8xf32, #tpu.memory_space<vmem>>, vector<2x8xf32>
    %20 = vector.broadcast %arg1 : i32 to vector<2x8xi32>
    %21 = arith.cmpi eq, %18, %20 : vector<2x8xi32>
    %cst_14 = arith.constant 0.000000e+00 : f32
    %22 = vector.shape_cast %17 : vector<2x1xf32> to vector<2x1xf32>
    %23 = vector.broadcast %22 : vector<2x1xf32> to vector<2x8xf32>
    %24 = vector.broadcast %cst_14 : f32 to vector<2x8xf32>
    %25 = arith.select %21, %23, %24 : vector<2x8xi1>, vector<2x8xf32>
    %26 = arith.addf %19, %25 : vector<2x8xf32>
    %c0_15 = arith.constant 0 : index
    %c0_16 = arith.constant 0 : index
    %27 = vector.load %arg9[%c0_15, %c0_16] : memref<2x8xf32, #tpu.memory_space<vmem>>, vector<2x8xf32>
    tpu.vector_store %arg9[%c0_15, %c0_16], %26 {strides = array<i32>} : memref<2x8xf32, #tpu.memory_space<vmem>>, vector<2x8xf32>,
    %c7_i32 = arith.constant 7 : i32
    %28 = arith.cmpi eq, %arg1, %c7_i32 : i32
    %29 = arith.extui %28 : i1 to i32
    %c0_i32_17 = arith.constant 0 : i32
    %30 = arith.cmpi ne, %29, %c0_i32_17 : i32
    scf.if %30 {
      %c0_18 = arith.constant 0 : index
      %c0_19 = arith.constant 0 : index
      %31 = vector.load %arg9[%c0_18, %c0_19] : memref<2x8xf32, #tpu.memory_space<vmem>>, vector<2x8xf32>
      %cst_20 = arith.constant 1.000000e+00 : f32
      %32 = vector.broadcast %cst_20 : f32 to vector<2x8xf32>
      %33 = arith.mulf %31, %32 : vector<2x8xf32>
      %cst_21 = arith.constant dense<0xFF800000> : vector<2xf32>
      %34 = vector.multi_reduction <maximumf>, %33, %cst_21 [1] : vector<2x8xf32> to vector<2xf32>
      %35 = vector.shape_cast %34 : vector<2xf32> to vector<2x1xf32>
      %36 = vector.broadcast %35 : vector<2x1xf32> to vector<2x8xf32>
      %37 = arith.subf %33, %36 : vector<2x8xf32>
      %38 = math.exp %37 : vector<2x8xf32>
      %cst_22 = arith.constant dense<0.000000e+00> : vector<2xf32>
      %39 = vector.multi_reduction <add>, %38, %cst_22 [1] : vector<2x8xf32> to vector<2xf32>
      %40 = vector.shape_cast %39 : vector<2xf32> to vector<2x1xf32>
      %41 = tpu.reciprocal %40 : vector<2x1xf32> -> vector<2x1xf32>
      %42 = vector.broadcast %41 : vector<2x1xf32> to vector<2x8xf32>
      %43 = arith.mulf %38, %42 : vector<2x8xf32>
      %c0_23 = arith.constant 0 : index
      %c0_24 = arith.constant 0 : index
      %44 = vector.load %arg9[%c0_23, %c0_24] : memref<2x8xf32, #tpu.memory_space<vmem>>, vector<2x8xf32>
      tpu.vector_store %arg9[%c0_23, %c0_24], %43 {strides = array<i32>} : memref<2x8xf32, #tpu.memory_space<vmem>>, vector<2x8xf32>,
    } else {
    }
    return
  }
  func.func @transform_0(%arg0: i32, %arg1: i32) -> (i32, i32, i32) {
    %c0_i32 = arith.constant 0 : i32
    %c0_i32_0 = arith.constant 0 : i32
    return %arg1, %arg0, %c0_i32 : i32, i32, i32
  }
  func.func @transform_1(%arg0: i32, %arg1: i32) -> (i32, i32) {
    %c0_i32 = arith.constant 0 : i32
    %c0_i32_0 = arith.constant 0 : i32
    return %arg0, %c0_i32 : i32, i32
  }
  func.func @transform_2(%arg0: i32, %arg1: i32) -> (i32, i32) {
    %c0_i32 = arith.constant 0 : i32
    %c0_i32_0 = arith.constant 0 : i32
    %c0_i32_1 = arith.constant 0 : i32
    return %c0_i32, %c0_i32_0 : i32, i32
  }
  func.func @transform_3(%arg0: i32, %arg1: i32) -> (i32, i32) {
    %c0_i32 = arith.constant 0 : i32
    %c0_i32_0 = arith.constant 0 : i32
    %c0_i32_1 = arith.constant 0 : i32
    return %c0_i32, %c0_i32_0 : i32, i32
  }
  func.func @transform_4(%arg0: i32, %arg1: i32) -> (i32, i32) {
    %c0_i32 = arith.constant 0 : i32
    %c0_i32_0 = arith.constant 0 : i32
    %c0_i32_1 = arith.constant 0 : i32
    return %c0_i32, %c0_i32_0 : i32, i32
  }
  func.func @transform_5(%arg0: i32, %arg1: i32) -> (i32, i32) {
    %c0_i32 = arith.constant 0 : i32
    %c0_i32_0 = arith.constant 0 : i32
    %c0_i32_1 = arith.constant 0 : i32
    return %c0_i32, %c0_i32_0 : i32, i32
  }
  func.func @transform_6(%arg0: i32, %arg1: i32) -> (i32, i32) {
    %c0_i32 = arith.constant 0 : i32
    %c0_i32_0 = arith.constant 0 : i32
    %c0_i32_1 = arith.constant 0 : i32
    return %c0_i32, %c0_i32_0 : i32, i32
  }
  func.func @transform_7(%arg0: i32, %arg1: i32) -> (i32, i32) {
    %c0_i32 = arith.constant 0 : i32
    %c0_i32_0 = arith.constant 0 : i32
    return %arg0, %c0_i32 : i32, i32
  }
}

</mosaic_0001>

<bundles_post_ra>
// kernel: tpu_custom_call.1
= control target key start
LH: loop header
LB: loop body
LE: loop exit
PB: predicated region body
PF: predicated region fallthrough
CT: control target
= control target key end

     0   :  { %s1220_s0 = inlined_call_operand.hbm [shape: f32[8,2,32], index: 0, kind: input, shape index: {}]   ;;  %s1221_s1 = inlined_call_operand.vmem [shape: f32[2,32], index: 1, kind: input, shape index: {}]   ;;  %s1222_s2 = inlined_call_operand.hbm [shape: f32[32,32], index: 2, kind: input, shape index: {}]   ;;  %s1223_s3 = inlined_call_operand.hbm [shape: f32[32,32], index: 3, kind: input, shape index: {}]   ;;  %s1224_s4 = inlined_call_operand.vmem [shape: f32[1,32], index: 4, kind: input, shape index: {}]   ;;  %s1225_s5 = inlined_call_operand.vmem [shape: f32[1,32], index: 5, kind: input, shape index: {}]   ;;  %s1226_s6 = inlined_call_operand.<no memory space> [shape: f32[1,1], index: 6, kind: input, shape index: {}]   ;;  %s1227_s7 = inlined_call_operand.hbm [shape: f32[2,8], index: 7, kind: output, shape index: {}]  }
   0x1   :  { %v12_v0 = vstv %s1226_s6 }
   0x2   :  { %13 = vst [vmem:[#allocation3] sm:$0x1] %v12_v0 }
   0x3   :  { %14 = vsyncpa [#allocation5], 0 }
   0x4   :  { %16 = vsyncpa [#allocation5 + $0x1], 0 }
   0x5   :  { %17 = vsyncpa [#allocation8], 0 }
   0x6   :  { %18 = vsyncpa [#allocation6], 0  ;;  %s1051_s26 = smov 0   ;;  %s1053_s27 = smov 0  }
   0x7   :  { %s1055_s28 = smov 0   ;;  %s1057_s29 = smov 0  }
   0x8   :  { %s1059_s30 = smov 0   ;;  %s1061_s8 = smov 0  }
   0x9 LB: > { %s681_s6 = sadd.s32 4294967295, %s995_s8   ;;  %p58_p0 = scmp.ne.s32.totalorder %s979_s27, %s975_s26  ;;  %s995_s8 = sphi %s1061_s8, %s24_s8   ;;  %s991_s30 = sphi %s1059_s30, %s1241_s30   ;;  %s987_s29 = sphi %s1057_s29, %s1240_s29   ;;  %s983_s28 = sphi %s1055_s28, %s1239_s28   ;;  %s979_s27 = sphi %s1053_s27, %s1238_s27   ;;  %s975_s26 = sphi %s1051_s26, %s1237_s26  }
   0xa   : > { %p1083_p1 = scmp.eq.s32.totalorder %s681_s6, 0  ;;  %p682_p2 = scmp.ge.s32.totalorder %s995_s8, 1 }
   0xb   : > { %p226_p3 = scmp.lt.s32.totalorder %s995_s8, 9  ;;  %s997_s12 = smov [#allocation7]  }
   0xc   : > { %s1230_s9 = scalar_select %p1083_p1, 1, 0 }
   0xd   : > { %p1091_p4 = por %p1083_p1, %p58_p0  ;;  %p1095_p5 = pnand %p682_p2, %p226_p3 }
   0xe   : > { %s245_s13 = sshll.u32 %s997_s12, 4  ;;  %s998_s15 = smov [#allocation9]   ;;  %s246_s13 = int_to_ptr.vmem [resolvable:$true] %s245_s13 }
   0xf   : > { %p750_p6 = pneg %p1095_p5  ;;  %s258_s16 = sshll.u32 %s998_s15, 4  ;;  %s259_s16 = int_to_ptr.vmem [resolvable:$true] %s258_s16 }
  0x10   : > { %s844_s17 = scalar_lea.vmem %s246_s13, 512  ;;  %p852_p12 = scmp.lt.s32.totalorder %s246_s13, %s246_s13 }
  0x11   : > { %p1103_p7 = pnand %p750_p6, %p1083_p1  ;;  %p845_p9 = scmp.ne.s32.totalorder %s246_s13, %s844_s17 }
  0x12   : > { %p853_p13 = scmp.lt.s32.totalorder %s844_s17, %s844_s17 }
  0x13   : > { %p835_p8 = pneg %p1103_p7 }
  0x14   : > { %p854_p0 = por %p853_p13, %p852_p12 }
  0x15   : > { %p847_p10 = pnand %p845_p9, %p835_p8 }
  0x17   : > { %p848_p11 = pneg %p847_p10 }
  0x19   : > { %p855_p2 = pnand %p854_p0, %p848_p11 }
  0x1b   : > { %858 = shalt.err (!%p855_p2)
}
  0x1c   : > { %s999_s18 = smov 128   ;;  %s1000_s19 = smov 8  }
  0x1d   : > { %753 = dma.hbm_to_vmem [thread:$0]  (!%p1103_p7), %s1222_s2, 512, %s246_s13, [#allocation8], %s999_s18, %s999_s18, %s1000_s19  }
  0x1e   : > { %s870_s22 = scalar_lea.vmem %s259_s16, 512  ;;  %p878_p10 = scmp.lt.s32.totalorder %s259_s16, %s259_s16 }
  0x1f   : > { %p871_p3 = scmp.ne.s32.totalorder %s259_s16, %s870_s22  ;;  %p879_p1 = scmp.lt.s32.totalorder %s870_s22, %s870_s22 }
  0x21   : > { %p873_p6 = pnand %p871_p3, %p835_p8  ;;  %p880_p12 = por %p879_p1, %p878_p10 }
  0x23   : > { %p874_p9 = pneg %p873_p6 }
  0x25   : > { %p881_p11 = pnand %p880_p12, %p874_p9 }
  0x27   : > { %884 = shalt.err (!%p881_p11)
}
  0x28   : > { %756 = dma.hbm_to_vmem [thread:$0]  (!%p1103_p7), %s1223_s3, 512, %s259_s16, [#allocation8], %s999_s18, %s999_s18, %s1000_s19  }
  0x29   : > { %s33_s25 = sadd.s32 1, %s991_s30  ;;  %s45_s26 = sadd.s32 1, %s983_s28 }
  0x2a   : > { %p34_p1 = scmp.ge.s32.totalorder %s33_s25, 8  ;;  %p52_p8 = scmp.ne.s32.totalorder %s983_s28, %s979_s27 }
  0x2b   : > { %p53_p13 = scmp.eq.s32.totalorder %s995_s8, 0  ;;  %p763_p0 = scmp.lt.s32.totalorder %s995_s8, 8 }
  0x2c   : > { %s1243_s25 = smov (%p34_p1, %s33_s25), 0  ;;  %s281_s12 = sand.u32 1, %s983_s28  }
  0x2d   : > { %p54_p2 = por %p53_p13, %p52_p8  ;;  %s40_s13 = ssub.s32 %s991_s30, %s1243_s25 }
  0x2e   : > { %p43_p3 = scmp.eq.s32.totalorder %s40_s13, 0  ;;  %s687_s14 = sshll.u32 %s281_s12, 1 }
  0x2f   : > { %s688_s15 = sshll.u32 %s991_s30, 5  ;;  %s285_s19 = scalar_lea.vmem [#allocation4], %s687_s14 }
  0x30   : > { %s1138_s17 = scalar_select %p43_p3, %s983_s28, %s45_s26  }
  0x31   : > { %s291_s18 = scalar_lea.hbm %s1220_s0, %s688_s15  ;;  %s293_s21 = sshll.u32 %s285_s19, 4  ;;  %s294_s21 = int_to_ptr.vmem [resolvable:$true] %s293_s21 }
  0x32   : > { %p1145_p7 = pnand %p763_p0, %p54_p2  ;;  %s282_s23 = scalar_lea.sflag [#allocation5], %s281_s12 }
  0x33   : > { %s898_s24 = scalar_lea.vmem %s294_s21, 32  ;;  %s1001_s26 = smov [#allocation4]  }
  0x34   : > { %p887_p6 = pneg %p1145_p7  ;;  %p899_p9 = scmp.ne.s32.totalorder %s294_s21, %s898_s24 }
  0x35   : > { %s903_s13 = sshll.u32 %s1001_s26, 4  ;;  %s904_s13 = int_to_ptr.vmem [resolvable:$false] %s903_s13 }
  0x36   : > { %p901_p10 = pnand %p899_p9, %p887_p6  ;;  %s905_s15 = scalar_lea.vmem %s904_s13, 64 }
  0x37   : > { %p906_p11 = scmp.lt.s32.totalorder %s294_s21, %s904_s13  ;;  %p907_p1 = scmp.lt.s32.totalorder %s905_s15, %s898_s24 }
  0x38   : > { %p902_p12 = pneg %p901_p10 }
  0x39   : > { %p908_p8 = por %p907_p1, %p906_p11 }
  0x3b   : > { %p909_p13 = pnand %p908_p8, %p902_p12 }
  0x3d   : > { %912 = shalt.err (!%p909_p13)
}
  0x3e   : > { %760 = dma.hbm_to_vmem [thread:$0]  (!%p1145_p7), %s291_s18, 32, %s294_s21, %s282_s23  }
  0x3f   : > { %302 = sbr.rel (%p1095_p5) target bundleno = 1108 (0x454), region = 48  ;;  %s304_s12 = sand.u32 (!%p1095_p5), 1, %s979_s27  }
  0x40   : > { %s1156_s14 = sshll.u32 (!%p1095_p5), %s304_s12, 1  ;;  %s305_s20 = scalar_lea.sflag (!%p1095_p5), [#allocation5], %s304_s12 }
  0x41   : > { %s308_s16 = scalar_lea.vmem (!%p1095_p5), [#allocation4], %s1156_s14 }
  0x44   : > { %962 = dma.done.wait (%p1091_p4), %s305_s20, 32  }
  0x45   : > { %964 = vsyncadd (%p1091_p4), %s305_s20, 4294967264  ;;  %p1235_p0 = scmp.ne.s32.totalorder %s1230_s9, 0 }
  0x47   : > { %966 = dma.done.wait (%p1235_p0), [#allocation8], 1024  }
  0x48   : > { %968 = vsyncadd (%p1235_p0), [#allocation8], 4294966272  ;;  %p693_p5 = scmp.ne.s32.totalorder %s987_s29, 0 }
  0x4a   : > { %353 = sbr.rel (%p693_p5) target bundleno = 284 (0x11c), region = 64 }
  0x4f   : > { %vm442_vm0 = vcmask 58368   ;;  %v358_v1 = vld [vmem:[#allocation7 + $0x18] sm:$0xff]  ;;  %v1002_v2 = vmov 0.0   ;;  %v357_v3 = vld [vmem:[#allocation7 + $0x10] sm:$0xff]  ;;  %vm1003_vm1 = vmmov 0   ;;  %v356_v4 = vld [vmem:[#allocation7 + $0x8] sm:$0xff] }
  0x50   : > { %714 = vmatprep.subr.mxu0 %v1002_v2  ;;  %443 = vst.msk [vmem:[#allocation10] sm:$0x3] %vm442_vm0, %v1002_v2  ;;  %722 = vmatprep.mubr.msk.f32.mxu0 %vm1003_vm1, %v1002_v2  ;;  %v355_v5 = vld [vmem:[#allocation7] sm:$0xff]  ;;  %v354_v6 = vld [vmem:[%s1221_s1] sm:$0x3]  ;;  %vm366_vm2 = vcmask 261120  }
  0x51   : > { %715 = vmatpush3.msra.mxu0 %v358_v1  ;;  %v694_v7 = vld [vmem:[%s1224_s4] ss:$0 sm:$0xff]  ;;  %vm440_vm3 = vcmask 254976  }
  0x52   : > { %716 = vmatprep.subr.mxu0 %v1002_v2 }
  0x53   : > { %717 = vmatpush3.msra.mxu0 %v357_v3 }
  0x54   : > { %718 = vmatprep.subr.mxu0 %v1002_v2 }
  0x55   : > { %719 = vmatpush3.msra.mxu0 %v356_v4 }
  0x56   : > { %720 = vmatprep.subr.mxu0 %v1002_v2 }
  0x57   : > { %721 = vmatpush3.msra.mxu0 %v355_v5 }
  0x58   : > { %723 = vmatmul.mubr.msk.f32.vlgmr.msra.gmra.mxu0 %vm366_vm2, %v354_v6 }
 0x118   : > { %v436_v8 = vpop.f32.mrf.mxu0 }
 0x119   : > { %v437_v9 = vadd.f32 %v694_v7, %v436_v8 }
 0x11a   : > { %v724_v10 = vpop.f32.mrf.mxu0 }
 0x11b   : > { %441 = vst.msk [vmem:[#allocation2] sm:$0x3] %vm440_vm3, %v437_v9 }
 0x11c PF: > { %v448_v11 = vld [vmem:[#allocation9 + $0x18] sm:$0xff]  ;;  %v1004_v12 = vmov 0.0   ;;  %v447_v13 = vld [vmem:[#allocation9 + $0x10] sm:$0xff]  ;;  %vm1005_vm4 = vmmov 0   ;;  %v446_v14 = vld [vmem:[#allocation9 + $0x8] sm:$0xff]  ;;  %vm450_vm5 = vcmask 261120   ;;  %v545_v29 = vlaneseq }
 0x11d   : > { %725 = vmatprep.subr.mxu0 %v1004_v12  ;;  %733 = vmatprep.mubr.msk.f32.mxu0 %vm1005_vm4, %v1004_v12  ;;  %v445_v15 = vld [vmem:[#allocation9] sm:$0xff]  ;;  %v444_v16 = vld [vmem:[%s308_s16] sm:$0x3]  ;;  %v697_v21 = vld [vmem:[%s1225_s5] ss:$0 sm:$0xff]  ;;  %vm533_vm6 = vcmask 254976   ;;  %v548_v31 = vstv %s987_s29 }
 0x11e   : > { %726 = vmatpush3.msra.mxu0 %v448_v11  ;;  %v1006_v25 = vmov 0   ;;  %v698_v26 = vld [vmem:[#allocation3] ss:$0 sm:$0xff]  ;;  %v546_v30 = vand.u32 127, %v545_v29  ;;  %v547_v32 = vld [vmem:[#allocation10] sm:$0x3] }
 0x11f   : > { %727 = vmatprep.subr.mxu0 %v1004_v12  ;;  %826 = vset.pattern.permute.xlu0 %v1006_v25  ;;  %vm557_vm8 = vcmask 58368   ;;  %p699_p4 = scmp.ne.s32.totalorder %s987_s29, 7 }
 0x120   : > { %728 = vmatpush3.msra.mxu0 %v447_v13  ;;  %vm549_vm7 = vcmp.eq.s32.totalorder %v546_v30, %v548_v31 }
 0x121   : > { %729 = vmatprep.subr.mxu0 %v1004_v12 }
 0x122   : > { %730 = vmatpush3.msra.mxu0 %v446_v14  ;;  %v449_v17 = vld [vmem:[#allocation2] sm:$0x3] }
 0x123   : > { %731 = vmatprep.subr.mxu0 %v1004_v12 }
 0x124   : > { %732 = vmatpush3.msra.mxu0 %v445_v15 }
 0x125   : > { %734 = vmatmul.mubr.msk.f32.vlgmr.msra.gmra.mxu0 %vm450_vm5, %v444_v16 }
 0x1e5   : > { %v520_v18 = vpop.f32.mrf.mxu0 }
 0x1e6   : > { %v521_v19 = vadd.f32 %v520_v18, %v449_v17 }
 0x1e7   : > { %v735_v20 = vpop.f32.mrf.mxu0 }
 0x1e8   : > { %827 = vtanh.f32 %v521_v19 }
 0x1f5   : > { %v828_v22 = vpop.eup %827 }
 0x1f6   : > { %v532_v23 = vmul.f32 %v828_v22, %v697_v21 }
 0x1f8   : > { %v534_v24 = vsel %vm533_vm6, %v532_v23, 0.0 }
 0x1f9   : > { %535 = vadd.xlane.f32.xlu0 %v534_v24 }
 0x282   : > { %v536_v27 = vpop.xlane.xlu0 %535 }
 0x283   : > { %v544_v28 = vadd.f32 %v698_v26, %v536_v27 }
 0x285   : > { %552 = vperm.xlu0 %826, %v544_v28  }
 0x300   : > { %v553_v33 = vpop.permute.xlu0 %552  ;;  %562 = sbr.rel (%p699_p4) target bundleno = 1093 (0x445), region = 68 }
 0x301   : > { %v555_v34 = vsel %vm549_vm7, %v553_v33, 0.0 }
 0x302   : > { %v556_v35 = vadd.f32 %v555_v34, %v547_v32 }
 0x304   : > { %558 = vst.msk [vmem:[#allocation10] sm:$0x3] %vm557_vm8, %v556_v35 }
 0x30b   : > { %v563_v36 = vld [vmem:[#allocation10] sm:$0x3] }
 0x30c   : > { %v564_v37 = vsel %vm557_vm8, %v563_v36, -inf }
 0x30d   : > { %565 = vmax.xlane.f32.xlu0 %v564_v37 }
 0x396   : > { %v566_v38 = vpop.xlane.xlu0 %565 }
 0x397   : > { %v567_v39 = vsub.f32 %v563_v36, %v566_v38 }
 0x399   : > { %v568_v40 = vmul.f32 1.442695, %v567_v39 }
 0x39b   : > { %829 = vpow2.f32 %v568_v40 }
 0x3a8   : > { %v830_v41 = vpop.eup %829 }
 0x3a9   : > { %v570_v42 = vsel %vm557_vm8, %v830_v41, 0.0 }
 0x3aa   : > { %571 = vadd.xlane.f32.xlu0 %v570_v42 }
 0x433   : > { %v572_v43 = vpop.xlane.xlu0 %571 }
 0x434   : > { %831 = vrcp.f32 %v572_v43 }
 0x441   : > { %v832_v44 = vpop.eup %831 }
 0x442   : > { %v574_v45 = vmul.f32 %v832_v44, %v830_v41 }
 0x444   : > { %575 = vst.msk [vmem:[#allocation10] sm:$0x3] %vm557_vm8, %v574_v45 }
 0x445 PF: > { %p1187_p2 = scmp.eq.s32.totalorder %s681_s6, 7  ;;  %s1007_s22 = smov [#allocation10]  }
 0x446   : > { %s585_s23 = sshll.u32 %s1007_s22, 4  ;;  %s586_s23 = int_to_ptr.vmem [resolvable:$true] %s585_s23 }
 0x447   : > { %s913_s24 = scalar_lea.vmem %s586_s23, 32  ;;  %p920_p9 = scmp.lt.s32.totalorder %s586_s23, %s586_s23 }
 0x448   : > { %p914_p3 = scmp.ne.s32.totalorder %s586_s23, %s913_s24  ;;  %p921_p10 = scmp.lt.s32.totalorder %s913_s24, %s913_s24 }
 0x44a   : > { %p915_p7 = pnand %p914_p3, %p1187_p2  ;;  %p922_p12 = por %p921_p10, %p920_p9 }
 0x44c   : > { %p916_p6 = pneg %p915_p7 }
 0x44e   : > { %p923_p11 = pnand %p922_p12, %p916_p6 }
 0x450   : > { %926 = shalt.err (!%p923_p11)
}
 0x451   : > { %747 = dma.vmem_to_hbm [thread:$0]  (%p1187_p2), %s586_s23, 32, %s1227_s7, [#allocation6]  }
 0x452   : > { %970 = dma.done.wait (%p1187_p2), [#allocation6], 32  }
 0x453   : > { %972 = vsyncadd (%p1187_p2), [#allocation6], 4294967264 }
 0x454 PF: > { %s24_s8 = sadd.s32 1, %s995_s8   ;;  %s1237_s26 = smov %s979_s27 }
 0x455   : > { %p21_p1 = scmp.ge.s32.totalorder %s24_s8, 10   ;;  %s1238_s27 = smov %s983_s28 }
 0x456   : > { %s1239_s28 = smov %s1138_s17  ;;  %s1240_s29 = smov %s991_s30 }
 0x457   : > { %s1241_s30 = smov %s1243_s25  ;;  %23 = sbr.rel (!%p21_p1) target bundleno = 9 (0x9), region = 105 }
 0x45c   :  { %598 = vsyncpa [#allocation5], 1 }
 0x45d   :  { %600 = vsyncpa [#allocation5 + $0x1], 1 }
 0x45e   :  { %601 = vsyncpa [#allocation8], 1 }
 0x45f   :  { %602 = vsyncpa [#allocation6], 1 }
 0x460   :  { %604 = vsyncpa [#allocation6 + $0x1], 1 }

</bundles_post_ra>
